<compile_context>
chip_gen: v5e
topology: v5e:2x2
jax: 0.10.0
libtpu: 0.0.40
codegen_flags: <defaults>
</compile_context>

<pallas_src>
import functools

import jax
import jax.numpy as jnp
from jax import lax
from jax.experimental import pallas as pl
from jax.experimental.pallas import tpu as pltpu


def _bert_output_kernel(x_ref, res_ref, w_ref, b_ref, gamma_ref, beta_ref,
                        out_ref, *, eps):
    # x_ref:   (TILE_N, I)  intermediate activations tile
    # res_ref: (TILE_N, H)  residual (input_tensor) tile
    # w_ref:   (I, H)       dense weight, pre-transposed so we compute x @ w
    # b_ref / gamma_ref / beta_ref: (1, H)
    # out_ref: (TILE_N, H)

    # dense: MXU matmul, f32 accumulation regardless of input dtype
    h = jnp.dot(x_ref[...], w_ref[...], preferred_element_type=jnp.float32)
    h = h + b_ref[...].astype(jnp.float32)

    # dropout: inference-mode identity
    # TODO(synk): training-mode dropout (pltpu.prng_random_bits mask) not implemented.

    # residual add
    h = h + res_ref[...].astype(jnp.float32)

    # LayerNorm over the hidden axis (biased variance, matching torch.nn.LayerNorm)
    mean = jnp.mean(h, axis=-1, keepdims=True)
    centered = h - mean
    var = jnp.mean(centered * centered, axis=-1, keepdims=True)
    normed = centered * lax.rsqrt(var + eps)
    out = (normed * gamma_ref[...].astype(jnp.float32)
           + beta_ref[...].astype(jnp.float32))

    out_ref[...] = out.astype(out_ref.dtype)


def bert_output(hidden_states, input_tensor, dense_weight, dense_bias,
                ln_gamma, ln_beta, *, eps=1e-12, tile_n=256):
    """Pallas forward for BertOutput.

    hidden_states : (B, S, I)  output of BertIntermediate
    input_tensor  : (B, S, H)  residual input
    dense_weight  : (H, I)     torch nn.Linear weight layout
    dense_bias    : (H,)
    ln_gamma/beta : (H,)
    """
    B, S, I = hidden_states.shape
    H = input_tensor.shape[-1]
    N = B * S

    x = hidden_states.reshape(N, I)
    res = input_tensor.reshape(N, H)
    w = jnp.transpose(dense_weight)          # (I, H) so the kernel does x @ w
    b = dense_bias.reshape(1, H)
    gamma = ln_gamma.reshape(1, H)
    beta = ln_beta.reshape(1, H)

    # Tile the token axis; keep I and H whole so the MXU sees the full K dim
    # and stores stay lane-dense.  A tile smaller than the whole array must be
    # a multiple of 8 (sublane granularity).
    tile_n = min(tile_n, N)
    if tile_n != N and tile_n % 8 != 0:
        tile_n = N
    grid_n = pl.cdiv(N, tile_n)

    out = pl.pallas_call(
        functools.partial(_bert_output_kernel, eps=eps),
        out_shape=jax.ShapeDtypeStruct((N, H), hidden_states.dtype),
        grid=(grid_n,),
        in_specs=[
            pl.BlockSpec((tile_n, I), lambda i: (i, 0)),   # x tile
            pl.BlockSpec((tile_n, H), lambda i: (i, 0)),   # residual tile
            pl.BlockSpec((I, H), lambda i: (0, 0)),        # weight (VMEM-resident)
            pl.BlockSpec((1, H), lambda i: (0, 0)),        # bias
            pl.BlockSpec((1, H), lambda i: (0, 0)),        # gamma
            pl.BlockSpec((1, H), lambda i: (0, 0)),        # beta
        ],
        out_specs=pl.BlockSpec((tile_n, H), lambda i: (i, 0)),
        compiler_params=pltpu.CompilerParams(
            dimension_semantics=("parallel",),
            vmem_limit_bytes=96 * 1024 * 1024),
    )(x, res, w, b, gamma, beta)

    return out.reshape(B, S, H)


if __name__ == "__main__":
    # small hyperparameters consistent with BertOutput's forward
    intermediate_size = 64
    hidden_size = 32
    layer_norm_eps = 1e-12
    B, S = 2, 8

    key = jax.random.PRNGKey(0)
    k_h, k_r, k_w, k_b = jax.random.split(key, 4)

    hidden_states = jax.random.normal(k_h, (B, S, intermediate_size), jnp.float32)
    input_tensor = jax.random.normal(k_r, (B, S, hidden_size), jnp.float32)
    dense_weight = 0.02 * jax.random.normal(
        k_w, (hidden_size, intermediate_size), jnp.float32)
    dense_bias = 0.01 * jax.random.normal(k_b, (hidden_size,), jnp.float32)
    ln_gamma = jnp.ones((hidden_size,), jnp.float32)
    ln_beta = jnp.zeros((hidden_size,), jnp.float32)

    # tile_n=8 exercises the token-axis grid even at this toy size
    out = bert_output(hidden_states, input_tensor, dense_weight, dense_bias,
                      ln_gamma, ln_beta, eps=layer_norm_eps, tile_n=8)
    out = jax.block_until_ready(out)

    # pure-JAX reference
    h = hidden_states.reshape(-1, intermediate_size) @ dense_weight.T + dense_bias
    h = h + input_tensor.reshape(-1, hidden_size)
    mean = h.mean(-1, keepdims=True)
    var = ((h - mean) ** 2).mean(-1, keepdims=True)
    ref = (h - mean) / jnp.sqrt(var + layer_norm_eps) * ln_gamma + ln_beta
    ref = ref.reshape(B, S, hidden_size)

    assert out.shape == (B, S, hidden_size)
    assert jnp.allclose(out, ref, atol=1e-4, rtol=1e-4), "mismatch vs reference"

    print("KERNEL_OK")
</pallas_src>

<mosaic_0001>
module attributes {stable_mosaic.version = 11 : i64} {
  func.func @_bert_output_kernel(%arg0: i32, %arg1: memref<8x64xf32, #tpu.memory_space<vmem>>, %arg2: memref<8x32xf32, #tpu.memory_space<vmem>>, %arg3: memref<64x32xf32, #tpu.memory_space<vmem>>, %arg4: memref<1x32xf32, #tpu.memory_space<vmem>>, %arg5: memref<1x32xf32, #tpu.memory_space<vmem>>, %arg6: memref<1x32xf32, #tpu.memory_space<vmem>>, %arg7: memref<8x32xf32, #tpu.memory_space<vmem>>) attributes {dimension_semantics = [#tpu.dimension_semantics<parallel>], iteration_bounds = array<i64: 2>, scalar_prefetch = 0 : i64, scratch_operands = 0 : i64, tpu.core_type = #tpu.core_type<tc>, window_params = [{transform_indices = @transform_0, window_bounds = array<i64: 8, 64>}, {transform_indices = @transform_1, window_bounds = array<i64: 8, 32>}, {pipeline_mode = #tpu.pipeline_mode<synchronous>, transform_indices = @transform_2, window_bounds = array<i64: 64, 32>}, {pipeline_mode = #tpu.pipeline_mode<synchronous>, transform_indices = @transform_3, window_bounds = array<i64: 1, 32>}, {pipeline_mode = #tpu.pipeline_mode<synchronous>, transform_indices = @transform_4, window_bounds = array<i64: 1, 32>}, {pipeline_mode = #tpu.pipeline_mode<synchronous>, transform_indices = @transform_5, window_bounds = array<i64: 1, 32>}, {transform_indices = @transform_6, window_bounds = array<i64: 8, 32>}]} {
    %c0 = arith.constant 0 : index
    %c0_0 = arith.constant 0 : index
    %0 = vector.load %arg1[%c0, %c0_0] : memref<8x64xf32, #tpu.memory_space<vmem>>, vector<8x64xf32>
    %c0_1 = arith.constant 0 : index
    %c0_2 = arith.constant 0 : index
    %1 = vector.load %arg3[%c0_1, %c0_2] : memref<64x32xf32, #tpu.memory_space<vmem>>, vector<64x32xf32>
    %cst = arith.constant dense<0.000000e+00> : vector<8x32xf32>
    %2 = tpu.matmul %0, %1, %cst {dimension_numbers = #tpu.dot_dimension_numbers<[1], [0], [0], [1], [0, 0, 1, 1], [], []>} : vector<8x64xf32>, vector<64x32xf32>, vector<8x32xf32> -> vector<8x32xf32>
    %c0_3 = arith.constant 0 : index
    %c0_4 = arith.constant 0 : index
    %3 = vector.load %arg4[%c0_3, %c0_4] : memref<1x32xf32, #tpu.memory_space<vmem>>, vector<1x32xf32>
    %4 = vector.broadcast %3 : vector<1x32xf32> to vector<8x32xf32>
    %5 = arith.addf %2, %4 : vector<8x32xf32>
    %c0_5 = arith.constant 0 : index
    %c0_6 = arith.constant 0 : index
    %6 = vector.load %arg2[%c0_5, %c0_6] : memref<8x32xf32, #tpu.memory_space<vmem>>, vector<8x32xf32>
    %7 = arith.addf %5, %6 : vector<8x32xf32>
    %cst_7 = arith.constant dense<0.000000e+00> : vector<8xf32>
    %8 = vector.multi_reduction <add>, %7, %cst_7 [1] : vector<8x32xf32> to vector<8xf32>
    %9 = vector.shape_cast %8 : vector<8xf32> to vector<8x1xf32>
    %cst_8 = arith.constant 3.200000e+01 : f32
    %10 = vector.broadcast %cst_8 : f32 to vector<8x1xf32>
    %11 = arith.divf %9, %10 : vector<8x1xf32>
    %12 = vector.broadcast %11 : vector<8x1xf32> to vector<8x32xf32>
    %13 = arith.subf %7, %12 : vector<8x32xf32>
    %14 = arith.mulf %13, %13 : vector<8x32xf32>
    %cst_9 = arith.constant dense<0.000000e+00> : vector<8xf32>
    %15 = vector.multi_reduction <add>, %14, %cst_9 [1] : vector<8x32xf32> to vector<8xf32>
    %16 = vector.shape_cast %15 : vector<8xf32> to vector<8x1xf32>
    %cst_10 = arith.constant 3.200000e+01 : f32
    %17 = vector.broadcast %cst_10 : f32 to vector<8x1xf32>
    %18 = arith.divf %16, %17 : vector<8x1xf32>
    %cst_11 = arith.constant 9.99999996E-13 : f32
    %19 = vector.broadcast %cst_11 : f32 to vector<8x1xf32>
    %20 = arith.addf %18, %19 : vector<8x1xf32>
    %21 = math.rsqrt %20 : vector<8x1xf32>
    %22 = vector.broadcast %21 : vector<8x1xf32> to vector<8x32xf32>
    %23 = arith.mulf %13, %22 : vector<8x32xf32>
    %c0_12 = arith.constant 0 : index
    %c0_13 = arith.constant 0 : index
    %24 = vector.load %arg5[%c0_12, %c0_13] : memref<1x32xf32, #tpu.memory_space<vmem>>, vector<1x32xf32>
    %25 = vector.broadcast %24 : vector<1x32xf32> to vector<8x32xf32>
    %26 = arith.mulf %23, %25 : vector<8x32xf32>
    %c0_14 = arith.constant 0 : index
    %c0_15 = arith.constant 0 : index
    %27 = vector.load %arg6[%c0_14, %c0_15] : memref<1x32xf32, #tpu.memory_space<vmem>>, vector<1x32xf32>
    %28 = vector.broadcast %27 : vector<1x32xf32> to vector<8x32xf32>
    %29 = arith.addf %26, %28 : vector<8x32xf32>
    %c0_16 = arith.constant 0 : index
    %c0_17 = arith.constant 0 : index
    %30 = vector.load %arg7[%c0_16, %c0_17] : memref<8x32xf32, #tpu.memory_space<vmem>>, vector<8x32xf32>
    tpu.vector_store %arg7[%c0_16, %c0_17], %29 {strides = array<i32>} : memref<8x32xf32, #tpu.memory_space<vmem>>, vector<8x32xf32>,
    return
  }
  func.func @transform_0(%arg0: i32) -> (i32, i32) {
    %c0_i32 = arith.constant 0 : i32
    %c0_i32_0 = arith.constant 0 : i32
    return %arg0, %c0_i32 : i32, i32
  }
  func.func @transform_1(%arg0: i32) -> (i32, i32) {
    %c0_i32 = arith.constant 0 : i32
    %c0_i32_0 = arith.constant 0 : i32
    return %arg0, %c0_i32 : i32, i32
  }
  func.func @transform_2(%arg0: i32) -> (i32, i32) {
    %c0_i32 = arith.constant 0 : i32
    %c0_i32_0 = arith.constant 0 : i32
    %c0_i32_1 = arith.constant 0 : i32
    return %c0_i32, %c0_i32_0 : i32, i32
  }
  func.func @transform_3(%arg0: i32) -> (i32, i32) {
    %c0_i32 = arith.constant 0 : i32
    %c0_i32_0 = arith.constant 0 : i32
    %c0_i32_1 = arith.constant 0 : i32
    return %c0_i32, %c0_i32_0 : i32, i32
  }
  func.func @transform_4(%arg0: i32) -> (i32, i32) {
    %c0_i32 = arith.constant 0 : i32
    %c0_i32_0 = arith.constant 0 : i32
    %c0_i32_1 = arith.constant 0 : i32
    return %c0_i32, %c0_i32_0 : i32, i32
  }
  func.func @transform_5(%arg0: i32) -> (i32, i32) {
    %c0_i32 = arith.constant 0 : i32
    %c0_i32_0 = arith.constant 0 : i32
    %c0_i32_1 = arith.constant 0 : i32
    return %c0_i32, %c0_i32_0 : i32, i32
  }
  func.func @transform_6(%arg0: i32) -> (i32, i32) {
    %c0_i32 = arith.constant 0 : i32
    %c0_i32_0 = arith.constant 0 : i32
    return %arg0, %c0_i32 : i32, i32
  }
}

</mosaic_0001>

<bundles_post_ra>
// kernel: tpu_custom_call.1
= control target key start
LH: loop header
LB: loop body
LE: loop exit
PB: predicated region body
PF: predicated region fallthrough
CT: control target
= control target key end

     0   :  { %11 = vsyncpa [#allocation3], 0  ;;  %s714_s0 = inlined_call_operand.vmem [shape: f32[16,64], index: 0, kind: input, shape index: {}]   ;;  %s715_s1 = inlined_call_operand.vmem [shape: f32[16,32], index: 1, kind: input, shape index: {}]   ;;  %s716_s2 = inlined_call_operand.vmem [shape: f32[64,32], index: 2, kind: input, shape index: {}]   ;;  %s717_s3 = inlined_call_operand.vmem [shape: f32[1,32], index: 3, kind: input, shape index: {}]   ;;  %s718_s4 = inlined_call_operand.vmem [shape: f32[1,32], index: 4, kind: input, shape index: {}]   ;;  %s719_s5 = inlined_call_operand.vmem [shape: f32[1,32], index: 5, kind: input, shape index: {}]   ;;  %s720_s6 = inlined_call_operand.hbm [shape: f32[16,32], index: 6, kind: output, shape index: {}]  }
   0x1   :  { %13 = vsyncpa [#allocation3 + $0x1], 0  ;;  %s590_s21 = smov 0   ;;  %s592_s22 = smov 0  }
   0x2   :  { %s594_s23 = smov 0   ;;  %s596_s24 = smov 0  }
   0x3 LB: > { %s611_s25 = sadd.s32 4294967295, %s552_s24   ;;  %s431_s26 = sadd.s32 4294967294, %s552_s24   ;;  %s552_s24 = sphi %s596_s24, %s726_s24   ;;  %s548_s23 = sphi %s594_s23, %s725_s23   ;;  %s544_s22 = sphi %s592_s22, %s724_s22   ;;  %s540_s21 = sphi %s590_s21, %s723_s21  }
   0x4   : > { %s615_s27 = sadd.s32 1, %s552_s24   ;;  %s162_s28 = sadd.s32 1, %s548_s23 }
   0x5   : > { %s159_s29 = ssub.s32 %s552_s24, %s615_s27  ;;  %p172_p0 = scmp.ne.s32.totalorder %s548_s23, %s544_s22 }
   0x6   : > { %p160_p1 = scmp.eq.s32.totalorder %s159_s29, 0  ;;  %p173_p2 = scmp.eq.s32.totalorder %s611_s25, 1 }
   0x7   : > { %p178_p3 = scmp.ne.s32.totalorder %s544_s22, %s540_s21  ;;  %p179_p4 = scmp.eq.s32.totalorder %s431_s26, 1 }
   0x8   : > { %s626_s30 = scalar_select %p160_p1, %s548_s23, %s162_s28  }
   0x9   : > { %p628_p5 = por %p173_p2, %p172_p0  ;;  %p632_p6 = por %p179_p4, %p178_p3 }
   0xa   : > { %p434_p7 = scmp.ge.s32.totalorder %s552_s24, 1  ;;  %p223_p8 = scmp.lt.s32.totalorder %s552_s24, 3 }
   0xc   : > { %p224_p9 = pnand %p434_p7, %p223_p8 }
   0xd   : > { %p256_p10 = scmp.lt.s32.totalorder (!%p224_p9), %s611_s25, 1  ;;  %s440_s28 = sshll.u32 (!%p224_p9), %s611_s25, 3 }
   0xe   : > { %227 = sbr.rel (%p224_p9) target bundleno = 436 (0x1b4), region = 44 }
  0x13   : > { %v272_v0 = vld [vmem:[%s716_s2 + $0x38] sm:$0xff]  ;;  %v271_v1 = vld [vmem:[%s716_s2 + $0x30] sm:$0xff]  ;;  %v270_v2 = vld [vmem:[%s716_s2 + $0x28] sm:$0xff]  ;;  %s257_s15 = scalar_select %p256_p10, %s611_s25, 1  ;;  %vm277_vm0 = vcmask 523264   ;;  %vm303_vm1 = vcmask 261120  }
  0x14   : > { %289 = vmatpush.msra.mxu0 %v272_v0  ;;  %v269_v3 = vld [vmem:[%s716_s2 + $0x20] sm:$0xff]  ;;  %v268_v4 = vld [vmem:[%s716_s2 + $0x18] sm:$0xff]  ;;  %v267_v5 = vld [vmem:[%s716_s2 + $0x10] sm:$0xff]  ;;  %v554_v15 = vmov 32.0  }
  0x15   : > { %s436_s20 = sshll.u32 %s257_s15, 3  ;;  %v266_v6 = vld [vmem:[%s716_s2 + $0x8] sm:$0xff]  ;;  %v265_v7 = vld [vmem:[%s716_s2] sm:$0xff]  ;;  %486 = vrcp.f32 %v554_v15 }
  0x16   : > { %290 = vmatpush.msra.mxu0 %v271_v1  ;;  %s259_s12 = scalar_lea.vmem %s714_s0, %s436_s20  ;;  %v483_v9 = vld [vmem:[%s717_s3] ss:$0 sm:$0xff]  ;;  %s263_s19 = scalar_lea.vmem %s715_s1, %s436_s20 }
  0x17   : > { %v264_v8 = vld [vmem:[%s259_s12] sm:$0xff]  ;;  %s253_s20 = sand.u32 1, %s544_s22   ;;  %s355_s12 = scalar_lea.hbm %s720_s6, %s440_s28 }
  0x18   : > { %291 = vmatpush.msra.mxu0 %v270_v2  ;;  %v301_v11 = vld [vmem:[%s263_s19] sm:$0xff]  ;;  %s435_s26 = sshll.u32 %s253_s20, 3  ;;  %s359_s16 = sshll.u32 %s355_s12, 4  ;;  %s360_s16 = int_to_ptr.hbm [resolvable:$true] %s359_s16 }
  0x19   : > { %v484_v36 = vld [vmem:[%s718_s4] ss:$0 sm:$0xff]  ;;  %s255_s15 = scalar_lea.vmem [#allocation2], %s435_s26  ;;  %s345_s17 = scalar_lea.sflag [#allocation3], %s253_s20 }
  0x1a   : > { %292 = vmatpush.msra.mxu0 %v269_v3  ;;  %v485_v39 = vld [vmem:[%s719_s5] ss:$0 sm:$0xff]  ;;  %s357_s25 = sshll.u32 %s255_s15, 4  ;;  %s504_s18 = sshra.s32 %s360_s16, 4  ;;  %s358_s25 = int_to_ptr.vmem [resolvable:$true] %s357_s25  ;;  %s505_s18 = int_to_ptr.hbm [resolvable:$true] %s504_s18 }
  0x1b   : > { %v487_v16 = vpop.eup %486  ;;  %s506_s19 = scalar_lea.hbm %s505_s18, 8  ;;  %s510_s26 = scalar_lea.hbm %s720_s6, 16 }
  0x1c   : > { %293 = vmatpush.msra.mxu0 %v268_v4  ;;  %v308_v17 = vmul.f32 32.0, %v487_v16  ;;  %vm312_vm2 = vweird.f32 %v487_v16  ;;  %p507_p11 = scmp.ne.s32.totalorder %s505_s18, %s506_s19  ;;  %p511_p0 = scmp.lt.s32.totalorder %s505_s18, %s720_s6 }
  0x1d   : > { %p512_p1 = scmp.lt.s32.totalorder %s510_s26, %s506_s19 }
  0x1e   : > { %294 = vmatpush.msra.mxu0 %v267_v5  ;;  %v309_v18 = vsub.f32 1.0, %v308_v17  ;;  %p508_p12 = pnand %p507_p11, %p628_p5 }
  0x1f   : > { %p513_p2 = por %p512_p1, %p511_p0 }
  0x20   : > { %295 = vmatpush.msra.mxu0 %v266_v6  ;;  %v310_v19 = vmul.f32 %v487_v16, %v309_v18  ;;  %p509_p13 = pneg %p508_p12 }
  0x22   : > { %296 = vmatpush.msra.mxu0 %v265_v7  ;;  %v311_v20 = vadd.f32 %v487_v16, %v310_v19  ;;  %p514_p3 = pnand %p513_p2, %p509_p13 }
  0x23   : > { %438 = vmatmul.msk.f32.vlgmr.msra.gmra.mxu0 %vm277_vm0, %v264_v8 }
  0x24   : > { %v313_v21 = vsel %vm312_vm2, %v487_v16, %v311_v20 }
  0xa0   : > { %v298_v10 = vpop.f32.mrf.mxu0 }
  0xa1   : > { %v299_v12 = vadd.f32 %v483_v9, %v298_v10 }
  0xa3   : > { %v302_v13 = vadd.f32 %v301_v11, %v299_v12 }
  0xa5   : > { %v304_v14 = vsel %vm303_vm1, %v302_v13, 0.0 }
  0xa6   : > { %305 = vadd.xlane.f32.xlu0 %v304_v14 }
 0x119   : > { %v306_v22 = vpop.xlane.xlu0 %305 }
 0x11a   : > { %v314_v23 = vmul.f32 %v313_v21, %v306_v22 }
 0x11c   : > { %v315_v24 = vsub.f32 %v302_v13, %v314_v23 }
 0x11e   : > { %v316_v25 = vmul.f32 %v315_v24, %v315_v24 }
 0x120   : > { %v317_v26 = vsel %vm303_vm1, %v316_v25, 0.0 }
 0x121   : > { %318 = vadd.xlane.f32.xlu0 %v317_v26 }
 0x194   : > { %v319_v27 = vpop.xlane.xlu0 %318 }
 0x195   : > { %v320_v28 = vmul.f32 %v319_v27, %v313_v21 }
 0x197   : > { %v321_v29 = vadd.f32 1e-12, %v320_v28 }
 0x199   : > { %488 = vrsqrt.f32 %v321_v29  ;;  %vm328_vm4 = vweird.f32 %v321_v29 }
 0x19f   : > { %v489_v30 = vpop.eup %488 }
 0x1a0   : > { %v323_v31 = vmul.f32 %v489_v30, %v321_v29  ;;  %vm329_vm3 = vweird.f32 %v489_v30 }
 0x1a1   : > { %vm330_vm5 = vmor %vm328_vm4, %vm329_vm3 }
 0x1a2   : > { %v324_v32 = vmul.f32 %v489_v30, %v323_v31 }
 0x1a4   : > { %v325_v33 = vmul.f32 0.5, %v324_v32 }
 0x1a6   : > { %v326_v34 = vsub.f32 1.5, %v325_v33 }
 0x1a8   : > { %v327_v35 = vmul.f32 %v489_v30, %v326_v34 }
 0x1aa   : > { %v331_v37 = vsel %vm330_vm5, %v489_v30, %v327_v35 }
 0x1ab   : > { %v332_v38 = vmul.f32 %v331_v37, %v315_v24 }
 0x1ad   : > { %v337_v40 = vmul.f32 %v484_v36, %v332_v38 }
 0x1af   : > { %v342_v41 = vadd.f32 %v485_v39, %v337_v40 }
 0x1b1   : > { %343 = vst.msk [vmem:[%s255_s15] sm:$0xff] %vm303_vm1, %v342_v41 }
 0x1b2   : > { %517 = shalt.err (!%p514_p3)
}
 0x1b3   : > { %443 = dma.vmem_to_hbm [thread:$0]  (%p628_p5), %s358_s25, 128, %s360_s16, %s345_s17  }
 0x1b4 PF: > { %p449_p4 = scmp.ge.s32.totalorder %s552_s24, 2  ;;  %s371_s20 = sand.u32 1, %s540_s21  }
 0x1b5   : > { %s372_s11 = scalar_lea.sflag [#allocation3], %s371_s20 }
 0x1b6   : > { %p446_p7 = pnand %p449_p4, %p632_p6 }
 0x1b8   : > { %p447_p8 = pneg %p446_p7 }
 0x1ba   : > { %535 = dma.done.wait (%p447_p8), %s372_s11, 128  }
 0x1bb   : > { %537 = vsyncadd (%p447_p8), %s372_s11, 4294967168  ;;  %p16_p9 = scmp.ge.s32.totalorder %s615_s27, 4   ;;  %s723_s21 = smov %s544_s22 }
 0x1bc   : > { %s724_s22 = smov %s548_s23  ;;  %s725_s23 = smov %s626_s30 }
 0x1bd   : > { %s726_s24 = smov %s615_s27  ;;  %18 = sbr.rel (!%p16_p9) target bundleno = 3 (0x3), region = 82 }
 0x1c2   :  { %378 = vsyncpa [#allocation3], 1 }
 0x1c3   :  { %380 = vsyncpa [#allocation3 + $0x1], 1 }

</bundles_post_ra>
